<compile_context>
chip_gen: v6e
topology: v6e:2x2x1
jax: 0.10.0
libtpu: 0.0.40
codegen_flags: <defaults>
</compile_context>

<pallas_src>
import functools

import jax
import jax.numpy as jnp
import numpy as np
from jax import lax
from jax.experimental import pallas as pl
from jax.experimental.pallas import tpu as pltpu


def _round_up(x, m):
    return ((x + m - 1) // m) * m


def _bilinear_kernel(head_ref, u_ref, dep_ref, out_ref, *, mxu_dtype=None):
    # head_ref : (1, I, D)     -- resident across the l-tile axis (index ignores lt)
    # u_ref    : (tl, D)       -- current tile of label diagonals (f32)
    # dep_ref  : (1, O, D)     -- resident per batch; contracted on its last dim
    # out_ref  : (1, tl*I, O)  -- contiguous output slab for this (b, l-tile)
    h = head_ref[0]                         # (I, D)
    u = u_ref[...]                          # (tl, D)
    d = dep_ref[0]                          # (O, D)
    tl, d_dim = u.shape
    i_dim = h.shape[0]

    # Fuse the label axis into the matmul M dimension (VPU broadcast-multiply, f32):
    #   scaled[l*I + i, j] = u[l, j] * h[i, j]
    scaled = (u[:, None, :] * h[None, :, :]).reshape(tl * i_dim, d_dim)
    if mxu_dtype is not None:
        scaled = scaled.astype(mxu_dtype)   # dep is already cast in the wrapper

    # Single (tl*I, D) x (O, D)^T MXU pass, contracting the last dims of both
    # operands (no transpose of dep anywhere); accumulate in f32.
    out_ref[0] = lax.dot_general(
        scaled, d,
        dimension_numbers=(((1,), (1,)), ((), ())),
        preferred_element_type=jnp.float32,
    ).astype(out_ref.dtype)


def _plan_label_tiling(L, I, *, target_m=1024, want_min_tiles=1):
    """Pick the label-tile size.  Returns (tl, L_pad, n_tiles).

    Tiles other than the full label axis must be multiples of 8 (sublane rule for
    the (tl, D) U block and the (1, tl*I, O) output block), so L may be zero-padded
    up to a multiple of 8.  Never falls back to fusing the whole label axis when
    that would exceed target_m (the old VMEM-blowup path).
    """
    L_pad8 = _round_up(L, 8)
    cands = [t for t in range(8, L_pad8 + 1, 8) if L_pad8 % t == 0]
    fitting = [t for t in cands if t * I <= target_m]

    if want_min_tiles >= 2:
        multi = [t for t in fitting if L_pad8 // t >= want_min_tiles]
        if multi:
            tl = max(multi)
            return tl, L_pad8, L_pad8 // tl

    if L * I <= target_m:
        return L, L, 1                       # fuse the whole label axis, no padding

    tl = max(fitting) if fitting else 8      # smallest legal tile as last resort
    return tl, L_pad8, L_pad8 // tl


def bilinear_label_attention(head, u_diag, dep, *, use_bf16_mxu=False,
                             out_dtype=None, l_tile=None):
    B, I, D = head.shape
    L, D2 = u_diag.shape
    B2, O, D3 = dep.shape
    assert D == D2 == D3 and B == B2
    out_dtype = jnp.dtype(out_dtype) if out_dtype is not None else jnp.dtype(jnp.float32)

    # Pad I to a sublane multiple so the in-kernel reshape and the (1, tl*I, O)
    # output block are layout-legal / relayout-free.
    I_pad = _round_up(I, 8)
    if I_pad != I:
        head = jnp.pad(head, ((0, 0), (0, I_pad - I), (0, 0)))

    # Hoist bf16 operand casts out of the kernel: halves head/dep HBM DMA + VMEM
    # and avoids re-casting the VMEM-resident dep tile on every label step.
    if use_bf16_mxu:
        head = head.astype(jnp.bfloat16)
        dep = dep.astype(jnp.bfloat16)
    in_b = jnp.dtype(head.dtype).itemsize
    out_b = out_dtype.itemsize

    # VMEM budget: ~80% of the physical per-core capacity (v7x: 64 MiB; v6e/v5e:
    # 128 MiB), instead of a hard-coded 64 MiB cap.
    try:
        vmem_cap = int(pltpu.get_tpu_info().vmem_capacity_bytes)
    except Exception:
        vmem_cap = 64 * 1024 * 1024
    vmem_budget = int(0.8 * vmem_cap)

    def footprint(tl):
        # Each BlockSpec counted at 2x (double-buffered); `scaled` counted once.
        f = 2 * (I_pad * D + O * D) * in_b          # head + dep blocks
        f += 2 * tl * D * 4                         # U tile
        f += 2 * tl * I_pad * O * out_b             # output block
        f += tl * I_pad * D * 4                     # `scaled` (f32 intermediate)
        if use_bf16_mxu:
            f += tl * I_pad * D * 2                 # bf16 copy of `scaled`
        if out_b != 4:
            f += tl * I_pad * O * 4                 # f32 matmul result before cast
        return f

    if l_tile is not None:
        tl = int(l_tile)
        assert tl == L or tl % 8 == 0, "l_tile must equal L or be a multiple of 8"
        L_pad = _round_up(L, tl)
        n_lt = L_pad // tl
    else:
        want_min_tiles = 2 if B == 1 else 1          # keep both v7x cores busy
        target_m = 2048                              # large M; shrunk to fit VMEM
        while True:
            tl, L_pad, n_lt = _plan_label_tiling(
                L, I_pad, target_m=target_m, want_min_tiles=want_min_tiles)
            if footprint(tl) <= vmem_budget or target_m <= 8:
                break
            target_m //= 2

    u_pad = u_diag if L_pad == L else jnp.pad(u_diag, ((0, L_pad - L), (0, 0)))

    # Scoped-VMEM limit from the real footprint (+ allowance for Mosaic scratch),
    # capped by the budget; modest 8 MiB floor instead of the old 32 MiB one.
    vmem_limit = int(min(vmem_budget, max(2 * footprint(tl) + (4 << 20), 8 << 20)))

    kernel = functools.partial(
        _bilinear_kernel, mxu_dtype=jnp.bfloat16 if use_bf16_mxu else None)

    out_flat = pl.pallas_call(
        kernel,
        out_shape=jax.ShapeDtypeStruct((B, L_pad * I_pad, O), out_dtype),
        grid_spec=pltpu.PrefetchScalarGridSpec(
            num_scalar_prefetch=0,
            grid=(B, n_lt),
            in_specs=[
                pl.BlockSpec((1, I_pad, D), lambda b, lt: (b, 0, 0)),   # head (resident per b)
                pl.BlockSpec((tl, D), lambda b, lt: (lt, 0)),           # U_diag tile
                pl.BlockSpec((1, O, D), lambda b, lt: (b, 0, 0)),       # dep (resident per b)
            ],
            out_specs=pl.BlockSpec((1, tl * I_pad, O), lambda b, lt: (b, lt, 0)),
        ),
        compiler_params=pltpu.CompilerParams(
            dimension_semantics=("parallel", "parallel"),
            vmem_limit_bytes=vmem_limit,
        ),
    )(head, u_pad, dep)

    # Free reshape of the contiguous slab; slice away label / I padding if any.
    out = out_flat.reshape(B, L_pad, I_pad, O)
    if L_pad != L or I_pad != I:
        out = out[:, :L, :I, :]
    return out


def xavier_uniform(key, shape, dtype=jnp.float32):
    fan_in, fan_out = shape[1], shape[0]
    bound = float(np.sqrt(6.0 / (fan_in + fan_out)))
    return jax.random.uniform(key, shape, dtype=dtype, minval=-bound, maxval=bound)


if __name__ == "__main__":
    B, I, O, D, L = 2, 8, 8, 32, 4  # batch, head-seq, dep-seq, hidden dim, n_labels

    key = jax.random.PRNGKey(0)
    k_head, k_dep, k_u = jax.random.split(key, 3)

    head = jax.random.normal(k_head, (B, I, D), dtype=jnp.float32)
    dep = jax.random.normal(k_dep, (B, O, D), dtype=jnp.float32)
    # create_parameter(n_labels, dim) -> xavier_uniform_ init (deterministic here)
    u_diag = xavier_uniform(k_u, (L, D))

    ref = jnp.einsum('bij,lj,boj->blio', head, u_diag, dep)

    # f32 MXU path (exact, default).
    out = jax.block_until_ready(bilinear_label_attention(head, u_diag, dep))
    np.testing.assert_allclose(np.asarray(out), np.asarray(ref), rtol=1e-5, atol=1e-5)

    # bf16 MXU operands, f32 accumulation (fast path) -- relaxed tolerance.
    out_bf16 = jax.block_until_ready(
        bilinear_label_attention(head, u_diag, dep, use_bf16_mxu=True))
    np.testing.assert_allclose(np.asarray(out_bf16), np.asarray(ref), rtol=5e-2, atol=1e-1)

    print("KERNEL_OK")
</pallas_src>

<mosaic_0001>
module attributes {stable_mosaic.version = 11 : i64} {
  func.func @_bilinear_kernel(%arg0: i32, %arg1: i32, %arg2: memref<1x8x32xf32, #tpu.memory_space<vmem>>, %arg3: memref<4x32xf32, #tpu.memory_space<vmem>>, %arg4: memref<1x8x32xf32, #tpu.memory_space<vmem>>, %arg5: memref<1x32x8xf32, #tpu.memory_space<vmem>>) attributes {dimension_semantics = [#tpu.dimension_semantics<parallel>, #tpu.dimension_semantics<parallel>], iteration_bounds = array<i64: 2, 1>, scalar_prefetch = 0 : i64, scratch_operands = 0 : i64, tpu.core_type = #tpu.core_type<tc>, window_params = [{transform_indices = @transform_0, window_bounds = array<i64: 1, 8, 32>}, {transform_indices = @transform_1, window_bounds = array<i64: 4, 32>}, {transform_indices = @transform_2, window_bounds = array<i64: 1, 8, 32>}, {transform_indices = @transform_3, window_bounds = array<i64: 1, 32, 8>}]} {
    %c0 = arith.constant 0 : index
    %c0_0 = arith.constant 0 : index
    %c0_1 = arith.constant 0 : index
    %0 = vector.load %arg2[%c0, %c0_0, %c0_1] : memref<1x8x32xf32, #tpu.memory_space<vmem>>, vector<1x8x32xf32>
    %1 = vector.shape_cast %0 : vector<1x8x32xf32> to vector<8x32xf32>
    %c0_2 = arith.constant 0 : index
    %c0_3 = arith.constant 0 : index
    %2 = vector.load %arg3[%c0_2, %c0_3] : memref<4x32xf32, #tpu.memory_space<vmem>>, vector<4x32xf32>
    %c0_4 = arith.constant 0 : index
    %c0_5 = arith.constant 0 : index
    %c0_6 = arith.constant 0 : index
    %3 = vector.load %arg4[%c0_4, %c0_5, %c0_6] : memref<1x8x32xf32, #tpu.memory_space<vmem>>, vector<1x8x32xf32>
    %4 = vector.shape_cast %3 : vector<1x8x32xf32> to vector<8x32xf32>
    %5 = vector.shape_cast %2 : vector<4x32xf32> to vector<4x1x32xf32>
    %6 = vector.shape_cast %1 : vector<8x32xf32> to vector<1x8x32xf32>
    %7 = vector.broadcast %5 : vector<4x1x32xf32> to vector<4x8x32xf32>
    %8 = vector.broadcast %6 : vector<1x8x32xf32> to vector<4x8x32xf32>
    %9 = arith.mulf %7, %8 : vector<4x8x32xf32>
    %10 = vector.shape_cast %9 : vector<4x8x32xf32> to vector<32x32xf32>
    %cst = arith.constant dense<0.000000e+00> : vector<32x8xf32>
    %11 = tpu.matmul %10, %4, %cst {dimension_numbers = #tpu.dot_dimension_numbers<[1], [1], [0], [0], [0, 0, 1, 0], [], []>} : vector<32x32xf32>, vector<8x32xf32>, vector<32x8xf32> -> vector<32x8xf32>
    %c0_7 = arith.constant 0 : index
    %c0_8 = arith.constant 0 : index
    %c0_9 = arith.constant 0 : index
    %12 = vector.load %arg5[%c0_7, %c0_8, %c0_9] : memref<1x32x8xf32, #tpu.memory_space<vmem>>, vector<1x32x8xf32>
    %13 = vector.shape_cast %12 : vector<1x32x8xf32> to vector<32x8xf32>
    %14 = vector.shape_cast %11 : vector<32x8xf32> to vector<1x32x8xf32>
    tpu.vector_store %arg5[%c0_7, %c0_8, %c0_9], %14 {strides = array<i32>} : memref<1x32x8xf32, #tpu.memory_space<vmem>>, vector<1x32x8xf32>,
    return
  }
  func.func @transform_0(%arg0: i32, %arg1: i32) -> (i32, i32, i32) {
    %c0_i32 = arith.constant 0 : i32
    %c0_i32_0 = arith.constant 0 : i32
    %c0_i32_1 = arith.constant 0 : i32
    return %arg0, %c0_i32, %c0_i32_0 : i32, i32, i32
  }
  func.func @transform_1(%arg0: i32, %arg1: i32) -> (i32, i32) {
    %c0_i32 = arith.constant 0 : i32
    %c0_i32_0 = arith.constant 0 : i32
    return %arg1, %c0_i32 : i32, i32
  }
  func.func @transform_2(%arg0: i32, %arg1: i32) -> (i32, i32, i32) {
    %c0_i32 = arith.constant 0 : i32
    %c0_i32_0 = arith.constant 0 : i32
    %c0_i32_1 = arith.constant 0 : i32
    return %arg0, %c0_i32, %c0_i32_0 : i32, i32, i32
  }
  func.func @transform_3(%arg0: i32, %arg1: i32) -> (i32, i32, i32) {
    %c0_i32 = arith.constant 0 : i32
    %c0_i32_0 = arith.constant 0 : i32
    return %arg0, %arg1, %c0_i32 : i32, i32, i32
  }
}

</mosaic_0001>

<bundles_post_ra>
// kernel: tpu_custom_call.1
= control target key start
LH: loop header
LB: loop body
LE: loop exit
PB: predicated region body
PF: predicated region fallthrough
CT: control target
= control target key end

     0   :  { %8 = vsyncpa [#allocation3], 0  ;;  %s988_s0 = inlined_call_operand.hbm [shape: f32[2,8,32], index: 0, kind: input, shape index: {}]   ;;  %s989_s1 = inlined_call_operand.hbm [shape: f32[4,32], index: 1, kind: input, shape index: {}]   ;;  %s990_s2 = inlined_call_operand.hbm [shape: f32[2,8,32], index: 2, kind: input, shape index: {}]   ;;  %s991_s3 = inlined_call_operand.vmem [shape: f32[2,32,8], index: 3, kind: output, shape index: {}]  }
   0x1   :  { %10 = vsyncpa [#allocation3 + $0x1], 0 }
   0x2   :  { %11 = vsyncpa [#allocation5], 0  ;;  %s824_s12 = smov 0   ;;  %s826_s13 = smov 0  }
   0x3   :  { %s828_s14 = smov 0   ;;  %s830_s15 = smov 0  }
   0x4   :  { %s832_s16 = smov 0   ;;  %s834_s17 = smov 0  }
   0x5 LB: > { %s29_s18 = sadd.s32 1, %s794_s16  ;;  %s36_s19 = sadd.s32 1, %s786_s14  ;;  %s798_s17 = sphi %s834_s17, %s17_s17   ;;  %s794_s16 = sphi %s832_s16, %s1008_s16   ;;  %s790_s15 = sphi %s830_s15, %s1007_s15   ;;  %s786_s14 = sphi %s828_s14, %s1006_s14   ;;  %s782_s13 = sphi %s826_s13, %s1005_s13   ;;  %s778_s12 = sphi %s824_s12, %s1004_s12  }
   0x6   : > { %p31_p0 = scmp.ge.s32.totalorder %s29_s18, 2  ;;  %p43_p1 = scmp.ne.s32.totalorder %s786_s14, %s782_s13 }
   0x7   : > { %p44_p2 = scmp.eq.s32.totalorder %s798_s17, 0  ;;  %p606_p4 = scmp.lt.s32.totalorder %s798_s17, 2 }
   0x8   : > { %s1010_s18 = smov (%p31_p0, %s29_s18), 0  ;;  %s166_s21 = sand.u32 1, %s798_s17  }
   0x9   : > { %p45_p3 = por %p44_p2, %p43_p1  ;;  %s33_s20 = ssub.s32 %s794_s16, %s1010_s18 }
   0xa   : > { %p34_p5 = scmp.eq.s32.totalorder %s33_s20, 0  ;;  %s168_s22 = sand.u32 1, %s786_s14  }
   0xb   : > { %s553_s23 = sshll.u32 %s794_s16, 7  ;;  %s870_s25 = sshll.u32 %s168_s22, 3 }
   0xc   : > { %s868_s24 = scalar_select %p34_p5, %s786_s14, %s36_s19  }
   0xd   : > { %s175_s28 = scalar_lea.hbm %s988_s0, %s553_s23  ;;  %p877_p6 = pnand %p606_p4, %p45_p3 }
   0xe   : > { %s170_s30 = scalar_lea.vmem [#allocation2], %s870_s25  ;;  %s882_s5 = scalar_lea.sflag [#allocation3], %s166_s21 }
   0xf   : > { %s177_s4 = sshll.u32 %s170_s30, 4  ;;  %p660_p7 = pneg %p877_p6  ;;  %s178_s4 = int_to_ptr.vmem [resolvable:$true] %s177_s4 }
  0x10   : > { %s671_s6 = scalar_lea.vmem %s178_s4, 128  ;;  %s800_s7 = smov [#allocation2]  }
  0x11   : > { %p672_p8 = scmp.ne.s32.totalorder %s178_s4, %s671_s6  ;;  %s676_s8 = sshll.u32 %s800_s7, 4  ;;  %s677_s8 = int_to_ptr.vmem [resolvable:$false] %s676_s8 }
  0x12   : > { %s678_s9 = scalar_lea.vmem %s677_s8, 256  ;;  %p679_p11 = scmp.lt.s32.totalorder %s178_s4, %s677_s8 }
  0x13   : > { %p674_p9 = pnand %p672_p8, %p660_p7  ;;  %p680_p12 = scmp.lt.s32.totalorder %s678_s9, %s671_s6 }
  0x15   : > { %p675_p10 = pneg %p674_p9  ;;  %p681_p13 = por %p680_p12, %p679_p11 }
  0x17   : > { %p682_p0 = pnand %p681_p13, %p675_p10 }
  0x19   : > { %685 = shalt.err (!%p682_p0)
}
  0x1a   : > { %601 = dma.hbm_to_vmem [thread:$0]  (!%p877_p6), %s175_s28, 128, %s178_s4, %s882_s5  }
  0x1b   : > { %s547_s10 = sadd.s32 4294967295, %s798_s17   ;;  %p49_p1 = scmp.ne.s32.totalorder %s782_s13, %s778_s12 }
  0x1c   : > { %p897_p2 = scmp.eq.s32.totalorder %s547_s10, 0  ;;  %p549_p3 = scmp.ge.s32.totalorder %s798_s17, 1 }
  0x1d   : > { %p140_p4 = scmp.lt.s32.totalorder %s798_s17, 3  ;;  %s801_s12 = smov [#allocation4]  }
  0x1e   : > { %s997_s11 = scalar_select %p897_p2, 1, 0 }
  0x1f   : > { %p905_p5 = por %p897_p2, %p49_p1  ;;  %p909_p8 = pnand %p549_p3, %p140_p4 }
  0x20   : > { %s155_s21 = sshll.u32 %s801_s12, 4  ;;  %s188_s22 = scalar_lea.vmem [#allocation6], %s870_s25  ;;  %s156_s21 = int_to_ptr.vmem [resolvable:$true] %s155_s21 }
  0x21   : > { %s998_s19 = scalar_select %p905_p5, 1, 0 }
  0x22   : > { %s999_s20 = scalar_select %p909_p8, 1, 0 }
  0x23   : > { %s195_s26 = sshll.u32 %s188_s22, 4  ;;  %s193_s30 = scalar_lea.hbm %s990_s2, %s553_s23  ;;  %s196_s26 = int_to_ptr.vmem [resolvable:$true] %s195_s26 }
  0x24   : > { %p594_p9 = pneg %p909_p8  ;;  %s699_s6 = scalar_lea.vmem %s196_s26, 128 }
  0x25   : > { %p700_p11 = scmp.ne.s32.totalorder %s196_s26, %s699_s6  ;;  %s802_s25 = smov [#allocation6]  }
  0x26   : > { %p923_p10 = pnand %p594_p9, %p897_p2  ;;  %s704_s7 = sshll.u32 %s802_s25, 4  ;;  %s705_s7 = int_to_ptr.vmem [resolvable:$false] %s704_s7 }
  0x27   : > { %p702_p12 = pnand %p700_p11, %p660_p7  ;;  %s706_s8 = scalar_lea.vmem %s705_s7, 256 }
  0x28   : > { %p707_p0 = scmp.lt.s32.totalorder %s196_s26, %s705_s7  ;;  %p708_p1 = scmp.lt.s32.totalorder %s706_s8, %s699_s6 }
  0x29   : > { %p703_p13 = pneg %p702_p12 }
  0x2a   : > { %p709_p3 = por %p708_p1, %p707_p0 }
  0x2c   : > { %p710_p4 = pnand %p709_p3, %p703_p13 }
  0x2e   : > { %713 = shalt.err (!%p710_p4)
}
  0x2f   : > { %604 = dma.hbm_to_vmem [thread:$0]  (!%p877_p6), %s193_s30, 128, %s196_s26, %s882_s5  }
  0x30   : > { %p716_p9 = pneg %p923_p10  ;;  %s725_s23 = scalar_lea.vmem %s156_s21, 64 }
  0x31   : > { %p726_p2 = scmp.ne.s32.totalorder %s156_s21, %s725_s23  ;;  %p733_p12 = scmp.lt.s32.totalorder %s156_s21, %s156_s21 }
  0x32   : > { %p734_p5 = scmp.lt.s32.totalorder %s725_s23, %s725_s23 }
  0x33   : > { %p728_p7 = pnand %p726_p2, %p716_p9 }
  0x34   : > { %p735_p8 = por %p734_p5, %p733_p12 }
  0x35   : > { %p729_p11 = pneg %p728_p7 }
  0x37   : > { %p736_p0 = pnand %p735_p8, %p729_p11 }
  0x39   : > { %739 = shalt.err (!%p736_p0)
}
  0x3a   : > { %597 = dma.hbm_to_vmem [thread:$0]  (!%p923_p10), %s989_s1, 64, %s156_s21, [#allocation5]  }
  0x3b   : > { %p1001_p13 = scmp.ne.s32.totalorder %s999_s20, 0 }
  0x3c   : > { %s206_s29 = sand.u32 (!%p1001_p13), 1, %s547_s10   ;;  %s208_s5 = sand.u32 (!%p1001_p13), 1, %s782_s13  }
  0x3d   : > { %204 = sbr.rel (%p1001_p13) target bundleno = 284 (0x11c), region = 32  ;;  %s557_s22 = sshll.u32 (!%p1001_p13), %s208_s5, 3 }
  0x3e   : > { %s207_s26 = scalar_lea.sflag (!%p1001_p13), [#allocation3], %s206_s29  ;;  %s210_s27 = scalar_lea.vmem (!%p1001_p13), [#allocation2], %s557_s22 }
  0x3f   : > { %p1002_p6 = scmp.ne.s32.totalorder (!%p1001_p13), %s998_s19, 0 }
  0x42   : > { %765 = dma.done.wait (%p1002_p6), %s207_s26, 128  }
  0x43   : > { %767 = vsyncadd (%p1002_p6), %s207_s26, 4294967168  ;;  %p1003_p2 = scmp.ne.s32.totalorder %s997_s11, 0 }
  0x45   : > { %769 = dma.done.wait (%p1003_p2), [#allocation5], 64  }
  0x46   : > { %771 = vsyncadd (%p1003_p2), [#allocation5], 4294967232  ;;  %s223_s20 = scalar_lea.vmem [#allocation6], %s557_s22 }
  0x47   : > { %773 = dma.done.wait (%p1002_p6), %s207_s26, 128  }
  0x48   : > { %775 = vsyncadd (%p1002_p6), %s207_s26, 4294967168  ;;  %v280_v0 = vlaneseq  ;;  %v803_v1 = vmov 1966171168   ;;  %vm317_vm0 = vcmask 261120   ;;  %v267_v7 = vld [vmem:[%s223_s20] sm:$0xff]  ;;  %v265_v11 = vld [vmem:[%s210_s27] sm:$0xff] }
  0x49   : > { %v278_v2 = vunpack.c.l.s4 %v803_v1  ;;  %v562_v8 = vld.sshfl [vmem:[#allocation4] sm:$0x33 pattern:$0x75316420]  ;;  %576 = vmatprep.subr.msk.mxu0 %vm317_vm0, %v267_v7  ;;  %584 = vmatprep.subr.msk.mxu1 %vm317_vm0, %v267_v7  ;;  %p256_p5 = scmp.lt.s32.totalorder %s790_s15, 1  ;;  %vm418_vm1 = vcmask 64512  }
  0x4a   : > { %v281_v3 = vshrl.u32 %v280_v0, 7  ;;  %v276_v9 = vcombine.high %v562_v8, %v562_v8  ;;  %577 = vmatpush3.xpose.msk.msra.mxu0 %vm317_vm0, %v267_v7  ;;  %585 = vmatpush3.xpose.msk.msra.mxu1 %vm317_vm0, %v267_v7 }
  0x4b   : > { %v279_v4 = vunpack.c.0.s8 %v278_v2  ;;  %s1012_s15 = smov (!%p256_p5, %s790_s15), 1 }
  0x4c   : > { %v295_v6 = vsub.s32 0, %v281_v3  ;;  %s570_s10 = sshll.u32 %s1012_s15, 5 }
  0x4d   : > { %v282_v5 = vsub.s32 %v279_v4, %v281_v3  ;;  %s263_s21 = scalar_lea.vmem %s991_s3, %s570_s10 }
  0x4f   : > { %v283_v10 = vrot.slane %v562_v8, %v282_v5  ;;  %v290_v12 = vrot.slane %v276_v9, %v282_v5 }
  0x51   : > { %v296_v13 = vrot.slane %v283_v10, %v295_v6  ;;  %v291_v14 = vcombine.high %v283_v10, %v283_v10  ;;  %v300_v16 = vrot.slane %v290_v12, %v295_v6  ;;  %v292_v18 = vcombine.high %v290_v12, %v290_v12 }
  0x53   : > { %v313_v15 = vmul.f32 %v296_v13, %v265_v11  ;;  %v304_v17 = vrot.slane %v291_v14, %v295_v6  ;;  %v314_v19 = vmul.f32 %v300_v16, %v265_v11  ;;  %v308_v21 = vrot.slane %v292_v18, %v295_v6 }
  0x55   : > { %578 = vmatprep.mubr.msk.f32.mxu0 %vm317_vm0, %v313_v15  ;;  %v315_v20 = vmul.f32 %v304_v17, %v265_v11  ;;  %v316_v22 = vmul.f32 %v308_v21, %v265_v11 }
  0x56   : > { %579 = vmatmul.mubr.msk.f32.vlgmr.msra.gmra.mxu0 %vm317_vm0, %v314_v19 }
  0x57   : > { %581 = vmatprep.mubr.msk.f32.mxu1 %vm317_vm0, %v315_v20 }
  0x58   : > { %582 = vmatmul.mubr.msk.f32.vlgmr.msra.gmra.mxu1 %vm317_vm0, %v316_v22 }
 0x116   : > { %v580_v23 = vpop.f32.mrf.mxu0 }
 0x117   : > { %420 = vst.msk [vmem:[%s263_s21 + $0x8] sm:$0xff] %vm418_vm1, %v580_v23 }
 0x118   : > { %v399_v24 = vpop.f32.mrf.mxu0  ;;  %v583_v25 = vpop.f32.mrf.mxu1 }
 0x119   : > { %419 = vst.msk [vmem:[%s263_s21] sm:$0xff] %vm418_vm1, %v399_v24  ;;  %422 = vst.msk [vmem:[%s263_s21 + $0x18] sm:$0xff] %vm418_vm1, %v583_v25 }
 0x11a   : > { %v409_v26 = vpop.f32.mrf.mxu1 }
 0x11b   : > { %421 = vst.msk [vmem:[%s263_s21 + $0x10] sm:$0xff] %vm418_vm1, %v409_v26 }
 0x11c PF: > { %s17_s17 = sadd.s32 1, %s798_s17   ;;  %s1004_s12 = smov %s782_s13 }
 0x11d   : > { %p14_p8 = scmp.ge.s32.totalorder %s17_s17, 4   ;;  %s1005_s13 = smov %s786_s14 }
 0x11e   : > { %s1006_s14 = smov %s868_s24  ;;  %s1007_s15 = smov %s794_s16 }
 0x11f   : > { %s1008_s16 = smov %s1010_s18  ;;  %16 = sbr.rel (!%p14_p8) target bundleno = 5 (0x5), region = 88 }
 0x124   :  { %453 = vsyncpa [#allocation3], 1 }
 0x125   :  { %455 = vsyncpa [#allocation3 + $0x1], 1 }
 0x126   :  { %456 = vsyncpa [#allocation5], 1 }

</bundles_post_ra>
